<compile_context>
chip_gen: v7x
topology: tpu7x:2x2x1
jax: 0.10.0
libtpu: 0.0.40
codegen_flags: <defaults>
</compile_context>

<pallas_src>
import numpy as np
import jax
import jax.numpy as jnp
from jax.experimental import pallas as pl
from jax.experimental.pallas import tpu as pltpu

GAMMA = 2.0
EPS = 1e-6
NOISE_PENALTY = 0.1

_LANES = 128
_ROW_GRAN = 32          # sublane granule that is safe for f32/int32/int8 tiles


def _round_up(x, m):
    return (x + m - 1) // m * m


def _make_kernel(*, n_rows, block_rows, width, n_classes, fold, gamma, eps,
                 noise_penalty, use_indices, has_mask):
    gamma = float(gamma)
    eps = float(eps)
    noise_penalty = float(noise_penalty)
    C = int(n_classes)
    F = int(fold)
    W = int(width)            # = F * C (packed row width)

    def group_sum(x):
        """Sum within each aligned C-lane group, broadcast back to the group.

        F == 1: the group is the whole row -> ordinary keepdims row-sum.
        F  > 1: C divides 128 (so C is a power of two); an XOR butterfly of
        lane rolls leaves every lane holding its group's sum (XLU + VPU only).
        """
        if F == 1:
            return jnp.sum(x, axis=1, keepdims=True)
        lane = jax.lax.broadcasted_iota(jnp.int32, x.shape, 1)
        s = 1
        while s < C:
            up = pltpu.roll(x, shift=W - s, axis=1)    # up[l] = x[l + s]
            dn = pltpu.roll(x, shift=s, axis=1)        # dn[l] = x[l - s]
            x = x + jnp.where((lane & s) == 0, up, dn)
            s *= 2
        return x

    def kernel(*refs):
        if has_mask:
            a_ref, t_ref, m_ref, out_ref = refs
        else:
            a_ref, t_ref, out_ref = refs
            m_ref = None

        i = pl.program_id(0)

        a = a_ref[...].astype(jnp.float32)                      # (BP, W)
        a0 = group_sum(a)                                       # alpha_0 / row
        inv_a0 = 1.0 / a0

        lane = jax.lax.broadcasted_iota(jnp.int32, (block_rows, W), 1)
        row = i * block_rows + jax.lax.broadcasted_iota(
            jnp.int32, (block_rows, 1), 0)
        valid = row < n_rows                                    # (BP, 1) bool

        if use_indices:
            # Hard labels: t_ref is (BP, F) int32, one class index per folded
            # logical row.  Rebuild the packed one-hot with F lane compares.
            onehot = lane == t_ref[:, 0:1]
            for f in range(1, F):
                onehot = jnp.logical_or(
                    onehot, lane == t_ref[:, f:f + 1] + f * C)
            pt = a * inv_a0                                     # probs, all lanes
            loss = -jnp.log(pt + eps)
            base = 1.0 - pt + eps
            focal = base * base if gamma == 2.0 else jnp.exp(
                gamma * jnp.log(base))
            weighted = focal * loss
            sel = jnp.logical_and(onehot, valid)                # target lanes
        else:
            # Soft labels: t_ref is (BP, W) in the caller's float dtype.
            t = t_ref[...].astype(jnp.float32)
            probs = a * inv_a0
            pt = group_sum(probs * t)                           # per-row, bcast
            loss = -group_sum(t * jnp.log(probs + eps))
            base = 1.0 - pt + eps
            focal = base * base if gamma == 2.0 else jnp.exp(
                gamma * jnp.log(base))
            weighted = focal * loss
            if F == 1:
                sel = valid                                     # (BP, 1)
            else:
                sel = jnp.logical_and(lane % C == 0, valid)     # 1 lane / row

        # Focal part: sum of one selected lane per (valid) logical row.
        tile_sum = jnp.sum(jnp.where(sel, weighted, 0.0))

        if has_mask:
            m = m_ref[...].astype(jnp.float32)
            noise = a * (1.0 - m) * inv_a0                      # probs*(1-mask)
            tile_sum = tile_sum + noise_penalty * jnp.sum(
                jnp.where(valid, noise, 0.0))

        out_ref[...] = jnp.broadcast_to(tile_sum, out_ref.shape)

    return kernel


def focal_dirichlet_loss(alphas, targets, peak_mask=None, *, gamma=GAMMA,
                         eps=EPS, noise_penalty=NOISE_PENALTY,
                         max_block_rows=2048):
    """Pallas implementation of FocalDirichletLoss.forward (returns the mean)."""
    alphas = jnp.asarray(alphas)
    if not jnp.issubdtype(alphas.dtype, jnp.floating):
        alphas = alphas.astype(jnp.float32)
    n, c = alphas.shape
    targets = jnp.asarray(targets)
    use_indices = targets.ndim == 1
    has_mask = peak_mask is not None

    # Lane packing: fold F = 128//C logical rows into one 128-lane row whenever
    # C divides 128 and N % F == 0 (the reshape is then a free, contiguous view).
    if 2 <= c <= 64 and _LANES % c == 0 and n % (_LANES // c) == 0:
        fold = _LANES // c
    else:
        fold = 1                        # plain (N, C) fallback layout
    width = fold * c
    n_rows = n // fold                  # packed-row count

    a_in = alphas.reshape(n_rows, width)
    in_arrays = [a_in]
    widths = [width]

    if use_indices:
        t_in = targets.astype(jnp.int32).reshape(n_rows, fold)
        widths.append(fold)
    else:
        t_in = jnp.asarray(targets)
        if not jnp.issubdtype(t_in.dtype, jnp.floating):
            t_in = t_in.astype(jnp.float32)
        t_in = t_in.reshape(n_rows, width)
        widths.append(width)
    in_arrays.append(t_in)

    if has_mask:
        m_in = jnp.asarray(peak_mask)
        if m_in.dtype == jnp.bool_:
            m_in = m_in.astype(jnp.int8)        # 1 byte/elt HBM stream
        elif not jnp.issubdtype(m_in.dtype, jnp.floating):
            m_in = m_in.astype(jnp.float32)     # keep non-0/1 integer masks exact
        m_in = m_in.reshape(n_rows, width)
        in_arrays.append(m_in)
        widths.append(width)

    # Row-tile size: largest double-buffered footprint under ~20 MiB (safe on
    # v5e/v6e and within v7x's 64 MiB VMEM), capped at ceil(rows/2) so both
    # v7x TensorCores get a grid step when there is enough work.
    def _vmem_row_bytes(w, itemsize):
        return _round_up(max(w, _LANES), _LANES) * itemsize

    per_row = 2 * sum(_vmem_row_bytes(w, arr.dtype.itemsize)
                      for w, arr in zip(widths, in_arrays))
    budget = 20 * 1024 * 1024
    block_rows = min(max_block_rows, max(_ROW_GRAN, budget // per_row))
    if n_rows > _ROW_GRAN:
        block_rows = min(block_rows, _round_up(-(-n_rows // 2), _ROW_GRAN))
    block_rows = max(_ROW_GRAN, block_rows // _ROW_GRAN * _ROW_GRAN)
    block_rows = min(block_rows, _round_up(n_rows, _ROW_GRAN))

    grid = pl.cdiv(n_rows, block_rows)  # ragged last block; no padding copies
    in_specs = [pl.BlockSpec((block_rows, w), lambda i: (i, 0)) for w in widths]

    kernel = _make_kernel(
        n_rows=n_rows, block_rows=block_rows, width=width, n_classes=c,
        fold=fold, gamma=gamma, eps=eps, noise_penalty=noise_penalty,
        use_indices=use_indices, has_mask=has_mask)

    vmem_limit = int(min(max(32 << 20, block_rows * per_row + (4 << 20)),
                         100 << 20))

    partials = pl.pallas_call(
        kernel,
        out_shape=jax.ShapeDtypeStruct((grid, 8, 128), jnp.float32),
        grid=(grid,),
        in_specs=in_specs,
        out_specs=pl.BlockSpec((1, 8, 128), lambda i: (i, 0, 0)),
        compiler_params=pltpu.CompilerParams(
            dimension_semantics=("parallel",),
            vmem_limit_bytes=vmem_limit),
    )(*in_arrays)

    # Independent per-tile partial sums -> final mean in plain JAX.
    return jnp.sum(partials[:, 0, 0]) / n


def focal_dirichlet_loss_ref(alphas, targets, peak_mask=None, *, gamma=GAMMA,
                             eps=EPS, noise_penalty=NOISE_PENALTY):
    """Plain-JAX reference mirroring the PyTorch module."""
    alphas = jnp.asarray(alphas, jnp.float32)
    targets = jnp.asarray(targets)
    if targets.ndim == 1:
        targets = jax.nn.one_hot(targets, alphas.shape[1], dtype=jnp.float32)
    else:
        targets = targets.astype(jnp.float32)
    alpha_0 = jnp.sum(alphas, axis=1, keepdims=True)
    probs = alphas / alpha_0
    pt = jnp.sum(probs * targets, axis=1)
    focal_weight = (1.0 - pt + eps) ** gamma
    loss = -jnp.sum(targets * jnp.log(probs + eps), axis=1)
    weighted = focal_weight * loss
    if peak_mask is not None:
        noise = jnp.sum(probs * (1.0 - jnp.asarray(peak_mask, jnp.float32)),
                        axis=1)
        weighted = weighted + noise_penalty * noise
    return jnp.mean(weighted)


if __name__ == "__main__":
    key = jax.random.PRNGKey(0)
    N, C = 64, 16  # rows x classes
    k1, k2, k3 = jax.random.split(key, 3)

    # Dirichlet concentration parameters must be positive.
    alphas = jax.nn.softplus(jax.random.normal(k1, (N, C), jnp.float32)) + 0.1
    targets = jax.random.randint(k2, (N,), 0, C, dtype=jnp.int32)
    peak_mask = (jax.random.uniform(k3, (N, C)) > 0.5).astype(jnp.float32)

    ref = focal_dirichlet_loss_ref(alphas, targets, peak_mask)

    # 1) hard labels + float mask (lane-packed path, F = 8)
    out = jax.block_until_ready(focal_dirichlet_loss(alphas, targets, peak_mask))
    np.testing.assert_allclose(np.asarray(out), np.asarray(ref),
                               rtol=1e-5, atol=1e-5)

    # 2) hard labels, no mask (noise term statically skipped)
    out2 = jax.block_until_ready(focal_dirichlet_loss(alphas, targets, None))
    ref2 = focal_dirichlet_loss_ref(alphas, targets, None)
    np.testing.assert_allclose(np.asarray(out2), np.asarray(ref2),
                               rtol=1e-5, atol=1e-5)

    # 3) dense soft-label targets + bool mask (packed soft path, int8 mask)
    onehot = jax.nn.one_hot(targets, C, dtype=jnp.float32)
    out3 = jax.block_until_ready(
        focal_dirichlet_loss(alphas, onehot, peak_mask.astype(bool)))
    np.testing.assert_allclose(np.asarray(out3), np.asarray(ref),
                               rtol=1e-5, atol=1e-5)

    # 4) multi-tile grid + ragged last block, no padding copies (N = 5000)
    N2 = 5000
    k4, k5, k6 = jax.random.split(jax.random.PRNGKey(1), 3)
    alphas2 = jax.nn.softplus(jax.random.normal(k4, (N2, C), jnp.float32)) + 0.1
    targets2 = jax.random.randint(k5, (N2,), 0, C, dtype=jnp.int32)
    mask2 = (jax.random.uniform(k6, (N2, C)) > 0.5).astype(jnp.float32)
    out4 = jax.block_until_ready(focal_dirichlet_loss(alphas2, targets2, mask2))
    ref4 = focal_dirichlet_loss_ref(alphas2, targets2, mask2)
    np.testing.assert_allclose(np.asarray(out4), np.asarray(ref4),
                               rtol=1e-4, atol=1e-5)

    # 5) N not a multiple of the fold factor -> unpacked fallback + ragged blocks
    N3 = 101
    k7, k8, k9 = jax.random.split(jax.random.PRNGKey(2), 3)
    alphas3 = jax.nn.softplus(jax.random.normal(k7, (N3, C), jnp.float32)) + 0.1
    targets3 = jax.random.randint(k8, (N3,), 0, C, dtype=jnp.int32)
    mask3 = (jax.random.uniform(k9, (N3, C)) > 0.5).astype(jnp.float32)
    out5 = jax.block_until_ready(focal_dirichlet_loss(alphas3, targets3, mask3))
    ref5 = focal_dirichlet_loss_ref(alphas3, targets3, mask3)
    np.testing.assert_allclose(np.asarray(out5), np.asarray(ref5),
                               rtol=1e-5, atol=1e-5)

    print("KERNEL_OK")
</pallas_src>

<mosaic_0001>
module attributes {stable_mosaic.version = 11 : i64} {
  func.func @kernel(%arg0: i32, %arg1: memref<32x128xf32, #tpu.memory_space<vmem>>, %arg2: memref<32x8xi32, #tpu.memory_space<vmem>>, %arg3: memref<32x128xf32, #tpu.memory_space<vmem>>, %arg4: memref<1x8x128xf32, #tpu.memory_space<vmem>>) attributes {dimension_semantics = [#tpu.dimension_semantics<parallel>], iteration_bounds = array<i64: 1>, scalar_prefetch = 0 : i64, scratch_operands = 0 : i64, tpu.core_type = #tpu.core_type<tc>, window_params = [{transform_indices = @transform_0, window_bounds = array<i64: 32, 128>}, {transform_indices = @transform_1, window_bounds = array<i64: 32, 8>}, {transform_indices = @transform_2, window_bounds = array<i64: 32, 128>}, {transform_indices = @transform_3, window_bounds = array<i64: 1, 8, 128>}]} {
    %c0 = arith.constant 0 : index
    %c0_0 = arith.constant 0 : index
    %0 = vector.load %arg1[%c0, %c0_0] : memref<32x128xf32, #tpu.memory_space<vmem>>, vector<32x128xf32>
    %1 = tpu.iota {dimensions = array<i32: 1>} : vector<32x128xi32>
    %c127_i32 = arith.constant 127 : i32
    %2 = tpu.dynamic_rotate %0 by %c127_i32 dim 1 : vector<32x128xf32>, i32 -> vector<32x128xf32>
    %c1_i32 = arith.constant 1 : i32
    %3 = tpu.dynamic_rotate %0 by %c1_i32 dim 1 : vector<32x128xf32>, i32 -> vector<32x128xf32>
    %c1_i32_1 = arith.constant 1 : i32
    %4 = vector.broadcast %c1_i32_1 : i32 to vector<32x128xi32>
    %5 = arith.andi %1, %4 : vector<32x128xi32>
    %c0_i32 = arith.constant 0 : i32
    %6 = vector.broadcast %c0_i32 : i32 to vector<32x128xi32>
    %7 = arith.cmpi eq, %5, %6 : vector<32x128xi32>
    %8 = arith.select %7, %2, %3 : vector<32x128xi1>, vector<32x128xf32>
    %9 = arith.addf %0, %8 : vector<32x128xf32>
    %c126_i32 = arith.constant 126 : i32
    %10 = tpu.dynamic_rotate %9 by %c126_i32 dim 1 : vector<32x128xf32>, i32 -> vector<32x128xf32>
    %c2_i32 = arith.constant 2 : i32
    %11 = tpu.dynamic_rotate %9 by %c2_i32 dim 1 : vector<32x128xf32>, i32 -> vector<32x128xf32>
    %c2_i32_2 = arith.constant 2 : i32
    %12 = vector.broadcast %c2_i32_2 : i32 to vector<32x128xi32>
    %13 = arith.andi %1, %12 : vector<32x128xi32>
    %c0_i32_3 = arith.constant 0 : i32
    %14 = vector.broadcast %c0_i32_3 : i32 to vector<32x128xi32>
    %15 = arith.cmpi eq, %13, %14 : vector<32x128xi32>
    %16 = arith.select %15, %10, %11 : vector<32x128xi1>, vector<32x128xf32>
    %17 = arith.addf %9, %16 : vector<32x128xf32>
    %c124_i32 = arith.constant 124 : i32
    %18 = tpu.dynamic_rotate %17 by %c124_i32 dim 1 : vector<32x128xf32>, i32 -> vector<32x128xf32>
    %c4_i32 = arith.constant 4 : i32
    %19 = tpu.dynamic_rotate %17 by %c4_i32 dim 1 : vector<32x128xf32>, i32 -> vector<32x128xf32>
    %c4_i32_4 = arith.constant 4 : i32
    %20 = vector.broadcast %c4_i32_4 : i32 to vector<32x128xi32>
    %21 = arith.andi %1, %20 : vector<32x128xi32>
    %c0_i32_5 = arith.constant 0 : i32
    %22 = vector.broadcast %c0_i32_5 : i32 to vector<32x128xi32>
    %23 = arith.cmpi eq, %21, %22 : vector<32x128xi32>
    %24 = arith.select %23, %18, %19 : vector<32x128xi1>, vector<32x128xf32>
    %25 = arith.addf %17, %24 : vector<32x128xf32>
    %c120_i32 = arith.constant 120 : i32
    %26 = tpu.dynamic_rotate %25 by %c120_i32 dim 1 : vector<32x128xf32>, i32 -> vector<32x128xf32>
    %c8_i32 = arith.constant 8 : i32
    %27 = tpu.dynamic_rotate %25 by %c8_i32 dim 1 : vector<32x128xf32>, i32 -> vector<32x128xf32>
    %c8_i32_6 = arith.constant 8 : i32
    %28 = vector.broadcast %c8_i32_6 : i32 to vector<32x128xi32>
    %29 = arith.andi %1, %28 : vector<32x128xi32>
    %c0_i32_7 = arith.constant 0 : i32
    %30 = vector.broadcast %c0_i32_7 : i32 to vector<32x128xi32>
    %31 = arith.cmpi eq, %29, %30 : vector<32x128xi32>
    %32 = arith.select %31, %26, %27 : vector<32x128xi1>, vector<32x128xf32>
    %33 = arith.addf %25, %32 : vector<32x128xf32>
    %cst = arith.constant 1.000000e+00 : f32
    %34 = vector.broadcast %cst : f32 to vector<32x128xf32>
    %35 = arith.divf %34, %33 : vector<32x128xf32>
    %36 = tpu.iota {dimensions = array<i32: 1>} : vector<32x128xi32>
    %c32_i32 = arith.constant 32 : i32
    %37 = arith.muli %arg0, %c32_i32 : i32
    %38 = tpu.iota {dimensions = array<i32: 0>} : vector<32x1xi32>
    %39 = vector.broadcast %37 : i32 to vector<32x1xi32>
    %40 = arith.addi %39, %38 : vector<32x1xi32>
    %c8_i32_8 = arith.constant 8 : i32
    %41 = vector.broadcast %c8_i32_8 : i32 to vector<32x1xi32>
    %42 = arith.cmpi slt, %40, %41 : vector<32x1xi32>
    %c0_9 = arith.constant 0 : index
    %c0_10 = arith.constant 0 : index
    %43 = vector.load %arg2[%c0_9, %c0_10] : memref<32x8xi32, #tpu.memory_space<vmem>>, vector<32x1xi32>
    %44 = vector.broadcast %43 : vector<32x1xi32> to vector<32x128xi32>
    %45 = arith.cmpi eq, %36, %44 : vector<32x128xi32>
    %c0_11 = arith.constant 0 : index
    %c1 = arith.constant 1 : index
    %46 = vector.load %arg2[%c0_11, %c1] : memref<32x8xi32, #tpu.memory_space<vmem>>, vector<32x1xi32>
    %c16_i32 = arith.constant 16 : i32
    %47 = vector.broadcast %c16_i32 : i32 to vector<32x1xi32>
    %48 = arith.addi %46, %47 : vector<32x1xi32>
    %49 = vector.broadcast %48 : vector<32x1xi32> to vector<32x128xi32>
    %50 = arith.cmpi eq, %36, %49 : vector<32x128xi32>
    %51 = arith.ori %45, %50 : vector<32x128xi1>
    %c0_12 = arith.constant 0 : index
    %c2 = arith.constant 2 : index
    %52 = vector.load %arg2[%c0_12, %c2] : memref<32x8xi32, #tpu.memory_space<vmem>>, vector<32x1xi32>
    %c32_i32_13 = arith.constant 32 : i32
    %53 = vector.broadcast %c32_i32_13 : i32 to vector<32x1xi32>
    %54 = arith.addi %52, %53 : vector<32x1xi32>
    %55 = vector.broadcast %54 : vector<32x1xi32> to vector<32x128xi32>
    %56 = arith.cmpi eq, %36, %55 : vector<32x128xi32>
    %57 = arith.ori %51, %56 : vector<32x128xi1>
    %c0_14 = arith.constant 0 : index
    %c3 = arith.constant 3 : index
    %58 = vector.load %arg2[%c0_14, %c3] : memref<32x8xi32, #tpu.memory_space<vmem>>, vector<32x1xi32>
    %c48_i32 = arith.constant 48 : i32
    %59 = vector.broadcast %c48_i32 : i32 to vector<32x1xi32>
    %60 = arith.addi %58, %59 : vector<32x1xi32>
    %61 = vector.broadcast %60 : vector<32x1xi32> to vector<32x128xi32>
    %62 = arith.cmpi eq, %36, %61 : vector<32x128xi32>
    %63 = arith.ori %57, %62 : vector<32x128xi1>
    %c0_15 = arith.constant 0 : index
    %c4 = arith.constant 4 : index
    %64 = vector.load %arg2[%c0_15, %c4] : memref<32x8xi32, #tpu.memory_space<vmem>>, vector<32x1xi32>
    %c64_i32 = arith.constant 64 : i32
    %65 = vector.broadcast %c64_i32 : i32 to vector<32x1xi32>
    %66 = arith.addi %64, %65 : vector<32x1xi32>
    %67 = vector.broadcast %66 : vector<32x1xi32> to vector<32x128xi32>
    %68 = arith.cmpi eq, %36, %67 : vector<32x128xi32>
    %69 = arith.ori %63, %68 : vector<32x128xi1>
    %c0_16 = arith.constant 0 : index
    %c5 = arith.constant 5 : index
    %70 = vector.load %arg2[%c0_16, %c5] : memref<32x8xi32, #tpu.memory_space<vmem>>, vector<32x1xi32>
    %c80_i32 = arith.constant 80 : i32
    %71 = vector.broadcast %c80_i32 : i32 to vector<32x1xi32>
    %72 = arith.addi %70, %71 : vector<32x1xi32>
    %73 = vector.broadcast %72 : vector<32x1xi32> to vector<32x128xi32>
    %74 = arith.cmpi eq, %36, %73 : vector<32x128xi32>
    %75 = arith.ori %69, %74 : vector<32x128xi1>
    %c0_17 = arith.constant 0 : index
    %c6 = arith.constant 6 : index
    %76 = vector.load %arg2[%c0_17, %c6] : memref<32x8xi32, #tpu.memory_space<vmem>>, vector<32x1xi32>
    %c96_i32 = arith.constant 96 : i32
    %77 = vector.broadcast %c96_i32 : i32 to vector<32x1xi32>
    %78 = arith.addi %76, %77 : vector<32x1xi32>
    %79 = vector.broadcast %78 : vector<32x1xi32> to vector<32x128xi32>
    %80 = arith.cmpi eq, %36, %79 : vector<32x128xi32>
    %81 = arith.ori %75, %80 : vector<32x128xi1>
    %c0_18 = arith.constant 0 : index
    %c7 = arith.constant 7 : index
    %82 = vector.load %arg2[%c0_18, %c7] : memref<32x8xi32, #tpu.memory_space<vmem>>, vector<32x1xi32>
    %c112_i32 = arith.constant 112 : i32
    %83 = vector.broadcast %c112_i32 : i32 to vector<32x1xi32>
    %84 = arith.addi %82, %83 : vector<32x1xi32>
    %85 = vector.broadcast %84 : vector<32x1xi32> to vector<32x128xi32>
    %86 = arith.cmpi eq, %36, %85 : vector<32x128xi32>
    %87 = arith.ori %81, %86 : vector<32x128xi1>
    %88 = arith.mulf %0, %35 : vector<32x128xf32>
    %cst_19 = arith.constant 9.99999997E-7 : f32
    %89 = vector.broadcast %cst_19 : f32 to vector<32x128xf32>
    %90 = arith.addf %88, %89 : vector<32x128xf32>
    %91 = math.log %90 : vector<32x128xf32>
    %cst_20 = arith.constant 0.000000e+00 : f32
    %92 = vector.broadcast %cst_20 : f32 to vector<32x128xf32>
    %93 = arith.subf %92, %91 : vector<32x128xf32>
    %cst_21 = arith.constant 1.000000e+00 : f32
    %94 = vector.broadcast %cst_21 : f32 to vector<32x128xf32>
    %95 = arith.subf %94, %88 : vector<32x128xf32>
    %cst_22 = arith.constant 9.99999997E-7 : f32
    %96 = vector.broadcast %cst_22 : f32 to vector<32x128xf32>
    %97 = arith.addf %95, %96 : vector<32x128xf32>
    %98 = arith.mulf %97, %97 : vector<32x128xf32>
    %99 = arith.mulf %98, %93 : vector<32x128xf32>
    %100 = vector.broadcast %42 : vector<32x1xi1> to vector<32x128xi1>
    %101 = arith.andi %87, %100 : vector<32x128xi1>
    %cst_23 = arith.constant 0.000000e+00 : f32
    %102 = vector.broadcast %cst_23 : f32 to vector<32x128xf32>
    %103 = arith.select %101, %99, %102 : vector<32x128xi1>, vector<32x128xf32>
    %104 = vector.shape_cast %103 : vector<32x128xf32> to vector<1x32x128xf32>
    %cst_24 = arith.constant dense<0.000000e+00> : vector<1xf32>
    %105 = vector.multi_reduction <add>, %104, %cst_24 [1, 2] : vector<1x32x128xf32> to vector<1xf32>
    %106 = vector.shape_cast %105 : vector<1xf32> to vector<1x1x1xf32>
    %107 = vector.extract %106[0, 0, 0] : f32 from vector<1x1x1xf32>
    %c0_25 = arith.constant 0 : index
    %c0_26 = arith.constant 0 : index
    %108 = vector.load %arg3[%c0_25, %c0_26] : memref<32x128xf32, #tpu.memory_space<vmem>>, vector<32x128xf32>
    %cst_27 = arith.constant 1.000000e+00 : f32
    %109 = vector.broadcast %cst_27 : f32 to vector<32x128xf32>
    %110 = arith.subf %109, %108 : vector<32x128xf32>
    %111 = arith.mulf %0, %110 : vector<32x128xf32>
    %112 = arith.mulf %111, %35 : vector<32x128xf32>
    %cst_28 = arith.constant 0.000000e+00 : f32
    %113 = vector.shape_cast %42 : vector<32x1xi1> to vector<32x1xi1>
    %114 = vector.broadcast %113 : vector<32x1xi1> to vector<32x128xi1>
    %115 = vector.broadcast %cst_28 : f32 to vector<32x128xf32>
    %116 = arith.select %114, %112, %115 : vector<32x128xi1>, vector<32x128xf32>
    %117 = vector.shape_cast %116 : vector<32x128xf32> to vector<1x32x128xf32>
    %cst_29 = arith.constant dense<0.000000e+00> : vector<1xf32>
    %118 = vector.multi_reduction <add>, %117, %cst_29 [1, 2] : vector<1x32x128xf32> to vector<1xf32>
    %119 = vector.shape_cast %118 : vector<1xf32> to vector<1x1x1xf32>
    %120 = vector.extract %119[0, 0, 0] : f32 from vector<1x1x1xf32>
    %cst_30 = arith.constant 1.000000e-01 : f32
    %121 = arith.mulf %cst_30, %120 : f32
    %122 = arith.addf %107, %121 : f32
    %123 = vector.broadcast %122 : f32 to vector<1x8x128xf32>
    %c0_31 = arith.constant 0 : index
    %c0_32 = arith.constant 0 : index
    %c0_33 = arith.constant 0 : index
    %124 = vector.load %arg4[%c0_31, %c0_32, %c0_33] : memref<1x8x128xf32, #tpu.memory_space<vmem>>, vector<1x8x128xf32>
    tpu.vector_store %arg4[%c0_31, %c0_32, %c0_33], %123 {strides = array<i32>} : memref<1x8x128xf32, #tpu.memory_space<vmem>>, vector<1x8x128xf32>,
    return
  }
  func.func @transform_0(%arg0: i32) -> (i32, i32) {
    %c0_i32 = arith.constant 0 : i32
    %c0_i32_0 = arith.constant 0 : i32
    return %arg0, %c0_i32 : i32, i32
  }
  func.func @transform_1(%arg0: i32) -> (i32, i32) {
    %c0_i32 = arith.constant 0 : i32
    %c0_i32_0 = arith.constant 0 : i32
    return %arg0, %c0_i32 : i32, i32
  }
  func.func @transform_2(%arg0: i32) -> (i32, i32) {
    %c0_i32 = arith.constant 0 : i32
    %c0_i32_0 = arith.constant 0 : i32
    return %arg0, %c0_i32 : i32, i32
  }
  func.func @transform_3(%arg0: i32) -> (i32, i32, i32) {
    %c0_i32 = arith.constant 0 : i32
    %c0_i32_0 = arith.constant 0 : i32
    %c0_i32_1 = arith.constant 0 : i32
    return %arg0, %c0_i32, %c0_i32_0 : i32, i32, i32
  }
}

</mosaic_0001>

<bundles_post_ra>
// kernel: tpu_custom_call.1
= control target key start
LH: loop header
LB: loop body
LE: loop exit
PB: predicated region body
PF: predicated region fallthrough
CT: control target
= control target key end

     0   :  { %8 = vsyncpa [#allocation3], 0  ;;  %s745_s0 = inlined_call_operand.hbm [shape: f32[8,128], index: 0, kind: input, shape index: {}]   ;;  %s746_s1 = inlined_call_operand.hbm [shape: s32[8,8], index: 1, kind: input, shape index: {}]   ;;  %s747_s2 = inlined_call_operand.hbm [shape: f32[8,128], index: 2, kind: input, shape index: {}]   ;;  %s748_s3 = inlined_call_operand.hbm [shape: f32[1,8,128], index: 3, kind: output, shape index: {}]  }
   0x1   :  { %9 = vsyncpa [#allocation6], 0 }
   0x2   :  { %10 = vsyncpa [#allocation4], 0 }
   0x3   :  { %15 = vsyncadd [#allocation3], 384  ;;  %s625_s12 = smov [#allocation2]   ;;  %s531_s16 = scalar_lea.hbm %s745_s0, 128 }
   0x4   :  { %s16_s13 = sshll.u32 %s625_s12, 4  ;;  %p532_p0 = scmp.ne.s32.totalorder %s745_s0, %s531_s16  ;;  %s17_s13 = int_to_ptr.vmem [resolvable:$true] %s16_s13 }
   0x5   :  { %p535_p1 = scmp.lt.u32.totalorder %s531_s16, %s745_s0 }
   0x7   :  { %p537_p2 = pnand %p535_p1, %p532_p0 }
   0x9   :  { %540 = shalt.err (!%p537_p2)
}
   0xa   :  { %s541_s21 = scalar_lea.vmem %s17_s13, 128  ;;  %s545_s22 = scalar_lea.vmem %s17_s13, 512 }
   0xb   :  { %p542_p3 = scmp.ne.s32.totalorder %s17_s13, %s541_s21  ;;  %p546_p4 = scmp.lt.s32.totalorder %s17_s13, %s17_s13 }
   0xc   :  { %p547_p5 = scmp.lt.s32.totalorder %s545_s22, %s541_s21 }
   0xe   :  { %p548_p6 = por %p547_p5, %p546_p4 }
  0x10   :  { %p549_p7 = pnand %p548_p6, %p542_p3 }
  0x12   :  { %552 = shalt.err (!%p549_p7)
}
  0x13   :  { %s626_s23 = smov 128   ;;  %s627_s24 = smov 8  }
  0x14   :  { %22 = dma.hbm_to_vmem [thread:$0]  %s745_s0, 128, %s17_s13, [#allocation3], %s626_s23, %s626_s23, %s627_s24  }
  0x15   :  { %27 = vsyncadd [#allocation6], 384  ;;  %s628_s27 = smov [#allocation5]   ;;  %s553_s4 = scalar_lea.hbm %s746_s1, 128 }
  0x16   :  { %s28_s28 = sshll.u32 %s628_s27, 4  ;;  %p554_p8 = scmp.ne.s32.totalorder %s746_s1, %s553_s4  ;;  %s29_s28 = int_to_ptr.vmem [resolvable:$true] %s28_s28 }
  0x17   :  { %p557_p9 = scmp.lt.u32.totalorder %s553_s4, %s746_s1 }
  0x19   :  { %p559_p10 = pnand %p557_p9, %p554_p8 }
  0x1b   :  { %562 = shalt.err (!%p559_p10)
}
  0x1c   :  { %s563_s9 = scalar_lea.vmem %s29_s28, 128  ;;  %s567_s0 = scalar_lea.vmem %s29_s28, 512 }
  0x1d   :  { %p564_p11 = scmp.ne.s32.totalorder %s29_s28, %s563_s9  ;;  %p568_p12 = scmp.lt.s32.totalorder %s29_s28, %s29_s28 }
  0x1e   :  { %p569_p13 = scmp.lt.s32.totalorder %s567_s0, %s563_s9 }
  0x20   :  { %p570_p0 = por %p569_p13, %p568_p12 }
  0x22   :  { %p571_p1 = pnand %p570_p0, %p564_p11 }
  0x24   :  { %574 = shalt.err (!%p571_p1)
}
  0x25   :  { %34 = dma.hbm_to_vmem [thread:$0]  %s746_s1, 128, %s29_s28, [#allocation6], %s626_s23, %s626_s23, %s627_s24  }
  0x26   :  { %39 = vsyncadd [#allocation6], 384  ;;  %s629_s12 = smov [#allocation7]   ;;  %s575_s16 = scalar_lea.hbm %s747_s2, 128 }
  0x27   :  { %s40_s13 = sshll.u32 %s629_s12, 4  ;;  %p576_p2 = scmp.ne.s32.totalorder %s747_s2, %s575_s16  ;;  %s41_s13 = int_to_ptr.vmem [resolvable:$true] %s40_s13 }
  0x28   :  { %p579_p3 = scmp.lt.u32.totalorder %s575_s16, %s747_s2 }
  0x2a   :  { %p581_p4 = pnand %p579_p3, %p576_p2 }
  0x2c   :  { %584 = shalt.err (!%p581_p4)
}
  0x2d   :  { %s585_s21 = scalar_lea.vmem %s41_s13, 128  ;;  %s589_s1 = scalar_lea.vmem %s41_s13, 512 }
  0x2e   :  { %p586_p5 = scmp.ne.s32.totalorder %s41_s13, %s585_s21  ;;  %p590_p6 = scmp.lt.s32.totalorder %s41_s13, %s41_s13 }
  0x2f   :  { %p591_p7 = scmp.lt.s32.totalorder %s589_s1, %s585_s21 }
  0x31   :  { %p592_p8 = por %p591_p7, %p590_p6 }
  0x33   :  { %p593_p9 = pnand %p592_p8, %p586_p5 }
  0x35   :  { %596 = shalt.err (!%p593_p9)
}
  0x36   :  { %46 = dma.hbm_to_vmem [thread:$0]  %s747_s2, 128, %s41_s13, [#allocation6], %s626_s23, %s626_s23, %s627_s24  }
  0x37   :  { %619 = dma.done.wait [#allocation3], 512  }
  0x38   :  { %620 = vsyncadd [#allocation3], 4294966784 }
  0x39   :  { %621 = dma.done.wait [#allocation6], 1024  }
  0x3a   :  { %622 = vsyncadd [#allocation6], 4294966272  ;;  %v711_v0 = vld [vmem:[#allocation2] sm:$0xff]  ;;  %s630_s26 = smov 127   ;;  %s631_s27 = smov 1   ;;  %v60_v1 = vlaneseq  ;;  %v634_v9 = vmov 1  }
  0x3b   :  { %62 = vrot.lane.b32.xlu0 %v711_v0, %s630_s26  ;;  %s632_s2 = smov 126   ;;  %s633_s23 = smov 2   ;;  %519 = vset.pattern.permute.xlu1 %v634_v9  ;;  %v635_v10 = vmov 0   ;;  %v189_v19 = vld [vmem:[#allocation5] sm:$0xff]  ;;  %v639_v24 = vmov 2   ;;  %v640_v25 = vmov 3  }
  0x3c   :  { %v715_v2 = vand.u32 127, %v60_v1  ;;  %518 = vset.pattern.permute.xlu0 %v635_v10  ;;  %s636_s28 = smov 4   ;;  %s637_s29 = smov 124   ;;  %v209_v21 = vadd.s32 16, %v189_v19  ;;  %v233_v22 = vadd.s32 32, %v189_v19  ;;  %v257_v23 = vadd.s32 48, %v189_v19 }
  0x3d   :  { %s638_s30 = smov 120   ;;  %v281_v26 = vadd.s32 64, %v189_v19  ;;  %v329_v27 = vadd.s32 96, %v189_v19  ;;  %v641_v28 = vmov 4   ;;  %v642_v29 = vmov 6   ;;  %v441_v39 = vld [vmem:[#allocation7] sm:$0xff] }
  0x3e   :  { %v78_v3 = vand.u32 1, %v715_v2  ;;  %v104_v8 = vand.u32 2, %v715_v2  ;;  %v130_v15 = vand.u32 4, %v715_v2  ;;  %v305_v30 = vadd.s32 80, %v189_v19  ;;  %s645_s6 = smov [#allocation8]  }
  0x3f   :  { %70 = vrot.lane.b32.xlu0 %v711_v0, %s631_s27  ;;  %v643_v31 = vmov 5   ;;  %v644_v32 = vmov 7   ;;  %v353_v33 = vadd.s32 112, %v189_v19  ;;  %v156_v34 = vand.u32 8, %v715_v2  ;;  %s483_s7 = sshll.u32 %s645_s6, 4  ;;  %s484_s7 = int_to_ptr.vmem [resolvable:$true] %s483_s7 }
  0x40   :  { %vm79_vm0 = vcmp.eq.s32.totalorder %v78_v3, 0  ;;  %vm105_vm1 = vcmp.eq.s32.totalorder %v104_v8, 0  ;;  %vm131_vm2 = vcmp.eq.s32.totalorder %v130_v15, 0  ;;  %v445_v40 = vsub.f32 1.0, %v441_v39  ;;  %s597_s9 = scalar_lea.vmem %s484_s7, 128  ;;  %p602_p11 = scmp.lt.s32.totalorder %s484_s7, %s484_s7 }
  0x41   :  { %vm157_vm3 = vcmp.eq.s32.totalorder %v156_v34, 0  ;;  %p598_p10 = scmp.ne.s32.totalorder %s484_s7, %s597_s9  ;;  %p603_p12 = scmp.lt.s32.totalorder %s597_s9, %s597_s9 }
  0x42   :  { %v449_v41 = vmul.f32 %v445_v40, %v711_v0 }
  0x43   :  { %p604_p13 = por %p603_p12, %p602_p11 }
  0x45   :  { %p605_p0 = pnand %p604_p13, %p598_p10 }
  0xad   :  { %v63_v4 = vpop.permute.xlu0 %62 }
  0xb1   :  { %v71_v5 = vpop.permute.xlu0 %70 }
  0xb2   :  { %v80_v6 = vsel %vm79_vm0, %v63_v4, %v71_v5 }
  0xb3   :  { %v84_v7 = vadd.f32 %v80_v6, %v711_v0 }
  0xb5   :  { %88 = vrot.lane.b32.xlu1 %v84_v7, %s632_s2 }
  0xb9   :  { %96 = vrot.lane.b32.xlu1 %v84_v7, %s633_s23 }
 0x127   :  { %v89_v11 = vpop.permute.xlu1 %88 }
 0x12b   :  { %v97_v12 = vpop.permute.xlu1 %96 }
 0x12c   :  { %v106_v13 = vsel %vm105_vm1, %v89_v11, %v97_v12 }
 0x12d   :  { %v110_v14 = vadd.f32 %v106_v13, %v84_v7 }
 0x12f   :  { %122 = vrot.lane.b32.xlu1 %v110_v14, %s636_s28  ;;  %114 = vrot.lane.b32.xlu0 %v110_v14, %s637_s29 }
 0x1a1   :  { %v123_v16 = vpop.permute.xlu1 %122  ;;  %v115_v17 = vpop.permute.xlu0 %114 }
 0x1a2   :  { %v132_v18 = vsel %vm131_vm2, %v115_v17, %v123_v16 }
 0x1a3   :  { %v136_v20 = vadd.f32 %v132_v18, %v110_v14 }
 0x1a5   :  { %148 = vrot.lane.b32.xlu1 %v136_v20, %s627_s24  ;;  %140 = vrot.lane.b32.xlu0 %v136_v20, %s638_s30 }
 0x1a9   :  { %214 = vperm.xlu1 %519, %v209_v21   ;;  %194 = vperm.xlu0 %518, %v189_v19  }
 0x1ad   :  { %520 = vset.pattern.permute.xlu1 %v639_v24  ;;  %521 = vset.pattern.permute.xlu0 %v640_v25 }
 0x1ae   :  { %238 = vperm.xlu1 %520, %v233_v22   ;;  %262 = vperm.xlu0 %521, %v257_v23  }
 0x1b2   :  { %522 = vset.pattern.permute.xlu1 %v641_v28  ;;  %524 = vset.pattern.permute.xlu0 %v642_v29 }
 0x1b3   :  { %286 = vperm.xlu1 %522, %v281_v26   ;;  %334 = vperm.xlu0 %524, %v329_v27  }
 0x1b7   :  { %523 = vset.pattern.permute.xlu1 %v643_v31  ;;  %526 = vset.pattern.permute.xlu0 %v644_v32 }
 0x1b8   :  { %310 = vperm.xlu1 %523, %v305_v30  }
 0x1bc   :  { %525 = vset.pattern.permute.xlu1 %v644_v32 }
 0x1bd   :  { %358 = vperm.xlu1 %525, %v353_v33  }
 0x217   :  { %v149_v35 = vpop.permute.xlu1 %148  ;;  %v141_v36 = vpop.permute.xlu0 %140 }
 0x218   :  { %v158_v37 = vsel %vm157_vm3, %v141_v36, %v149_v35 }
 0x219   :  { %v162_v38 = vadd.f32 %v158_v37, %v136_v20 }
 0x21b   :  { %527 = vrcp.f32 %v162_v38 }
 0x225   :  { %v528_v42 = vpop.eup %527 }
 0x226   :  { %v453_v43 = vmul.f32 %v528_v42, %v449_v41  ;;  %v377_v44 = vmul.f32 %v528_v42, %v711_v0 }
 0x228   :  { %v215_v45 = vpop.permute.xlu1 %214  ;;  %464 = vadd.xlane.f32.xlu0 %v453_v43  ;;  %v381_v46 = vadd.f32 1e-06, %v377_v44  ;;  %v195_v48 = vpop.permute.xlu0 %194  ;;  %v397_v51 = vsub.f32 1.0, %v377_v44 }
 0x229   :  { %vm225_vm4 = vcmp.eq.s32.totalorder %v715_v2, %v215_v45  ;;  %vm205_vm5 = vcmp.eq.s32.totalorder %v715_v2, %v195_v48 }
 0x22a   :  { %529 = vlog2.f32 %v381_v46  ;;  %vm229_vm7 = vmor %vm205_vm5, %vm225_vm4  ;;  %v401_v56 = vadd.f32 1e-06, %v397_v51 }
 0x22c   :  { %v405_v58 = vmul.f32 %v401_v56, %v401_v56 }
 0x22d   :  { %v239_v47 = vpop.permute.xlu1 %238  ;;  %v263_v49 = vpop.permute.xlu0 %262 }
 0x22e   :  { %vm249_vm6 = vcmp.eq.s32.totalorder %v715_v2, %v239_v47  ;;  %vm273_vm9 = vcmp.eq.s32.totalorder %v715_v2, %v263_v49 }
 0x22f   :  { %vm253_vm8 = vmor %vm229_vm7, %vm249_vm6 }
 0x230   :  { %vm277_vm11 = vmor %vm253_vm8, %vm273_vm9 }
 0x232   :  { %v287_v50 = vpop.permute.xlu1 %286  ;;  %v335_v55 = vpop.permute.xlu0 %334 }
 0x233   :  { %vm297_vm10 = vcmp.eq.s32.totalorder %v715_v2, %v287_v50  ;;  %vm345_vm15 = vcmp.eq.s32.totalorder %v715_v2, %v335_v55 }
 0x234   :  { %v530_v52 = vpop.eup %529  ;;  %vm301_vm13 = vmor %vm277_vm11, %vm297_vm10 }
 0x235   :  { %v386_v53 = vmul.f32 0.6931472, %v530_v52 }
 0x237   :  { %v311_v54 = vpop.permute.xlu1 %310  ;;  %v393_v57 = vsub.f32 0.0, %v386_v53 }
 0x238   :  { %vm321_vm12 = vcmp.eq.s32.totalorder %v715_v2, %v311_v54 }
 0x239   :  { %vm325_vm14 = vmor %vm301_vm13, %vm321_vm12  ;;  %v409_v60 = vmul.f32 %v405_v58, %v393_v57 }
 0x23a   :  { %vm349_vm0 = vmor %vm325_vm14, %vm345_vm15 }
 0x23c   :  { %v359_v59 = vpop.permute.xlu1 %358 }
 0x23d   :  { %vm369_vm1 = vcmp.eq.s32.totalorder %v715_v2, %v359_v59 }
 0x23e   :  { %vm373_vm2 = vmor %vm349_vm0, %vm369_vm1 }
 0x23f   :  { %v425_v61 = vsel %vm373_vm2, %v409_v60, 0.0 }
 0x240   :  { %432 = vadd.xlane.f32.xlu1 %v425_v61 }
 0x2b5   :  { %v465_v62 = vpop.xlane.xlu0 %464 }
 0x2b6   :  { %v466_v63 = vrot.slane %v465_v62, 4 }
 0x2b8   :  { %v467_v0 = vadd.f32 %v466_v63, %v465_v62 }
 0x2ba   :  { %v468_v1 = vrot.slane %v467_v0, 2 }
 0x2bc   :  { %v469_v6 = vadd.f32 %v468_v1, %v467_v0 }
 0x2be   :  { %v470_v9 = vrot.slane %v469_v6, 1 }
 0x2c0   :  { %v471_v12 = vadd.f32 %v470_v9, %v469_v6 }
 0x2cd   :  { %v433_v3 = vpop.xlane.xlu1 %432 }
 0x2ce   :  { %v434_v4 = vrot.slane %v433_v3, 4 }
 0x2d0   :  { %v435_v5 = vadd.f32 %v434_v4, %v433_v3 }
 0x2d2   :  { %v436_v7 = vrot.slane %v435_v5, 2 }
 0x2d4   :  { %v437_v8 = vadd.f32 %v436_v7, %v435_v5 }
 0x2d6   :  { %v438_v10 = vrot.slane %v437_v8, 1 }
 0x2d8   :  { %v439_v11 = vadd.f32 %v438_v10, %v437_v8 }
 0x2da   :  { %493 = vpush %v439_v11 }
 0x2db   :  { %495 = vpush %v471_v12 }
 0x30b   :  { %s494_s24 = spop %493 }
 0x30c   :  { %s496_s4 = spop %495 }
 0x30d   :  { %s473_s5 = smul.f32 0.1, %s496_s4 }
 0x30f   :  { %s474_s8 = sadd.f32 %s494_s24, %s473_s5 }
 0x311   :  { %v475_v2 = vstv %s474_s8 }
 0x312   :  { %476 = vst [vmem:[#allocation8] sm:$0xff] %v475_v2 }
 0x313   :  { %608 = shalt.err (!%p605_p0)
}
 0x314   :  { %s609_s11 = scalar_lea.hbm %s748_s3, 128 }
 0x315   :  { %p610_p1 = scmp.ne.s32.totalorder %s748_s3, %s609_s11  ;;  %p613_p2 = scmp.lt.u32.totalorder %s609_s11, %s748_s3 }
 0x317   :  { %p615_p3 = pnand %p613_p2, %p610_p1 }
 0x319   :  { %618 = shalt.err (!%p615_p3)
}
 0x31a   :  { %486 = dma.vmem_to_hbm [thread:$0]  %s484_s7, 128, %s748_s3, [#allocation4]  }
 0x31b   :  { %623 = dma.done.wait [#allocation4], 128  }
 0x31c   :  { %624 = vsyncadd [#allocation4], 4294967168 }
 0x31d   :  { %490 = vsyncpa [#allocation3], 1 }
 0x31e   :  { %491 = vsyncpa [#allocation6], 1 }
 0x31f   :  { %492 = vsyncpa [#allocation4], 1 }

</bundles_post_ra>
